<compile_context>
chip_gen: v7x
topology: tpu7x:2x2x1
jax: 0.10.0
libtpu: 0.0.40
codegen_flags: <defaults>
</compile_context>

<pallas_src>
import functools

import jax
import jax.numpy as jnp
from jax.experimental import pallas as pl
from jax.experimental.pallas import tpu as pltpu

LN_EPS = 1e-5


def _layernorm(v, gamma, beta):
    mu = jnp.mean(v, axis=-1, keepdims=True)
    vc = v - mu
    var = jnp.mean(vc * vc, axis=-1, keepdims=True)
    return vc * jax.lax.rsqrt(var + LN_EPS) * gamma + beta


# -----------------------------------------------------------------------------
# Fused kernel: fc stack + attention MLP + softmax(time) + weighted reduction.
# One grid step handles TB batch elements.
# -----------------------------------------------------------------------------
def _fused_kernel(x_ref,
                  g1_ref, be1_ref, w1_ref, b1_ref,
                  g2_ref, be2_ref, w2_ref, b2_ref,
                  aw1m_ref, aw1u_ref, ab1_ref, aw2_ref, ab2_ref,
                  o_ref, *, tb, seq_len):
    TB, L = tb, seq_len
    F = x_ref.shape[-1]
    O = o_ref.shape[-1]

    # ---------------- fc stack on all TB*L rows at once ----------------
    x = x_ref[...].astype(jnp.float32).reshape(TB * L, F)

    xn = _layernorm(x, g1_ref[...], be1_ref[...])
    # Dropout(p=0.5) -> identity (eval mode).
    h = jnp.dot(xn.astype(w1_ref.dtype), w1_ref[...],
                preferred_element_type=jnp.float32) + b1_ref[...]
    h = jnp.maximum(h, 0.0)

    hn = _layernorm(h, g2_ref[...], be2_ref[...])
    fc2 = jnp.dot(hn.astype(w2_ref.dtype), w2_ref[...],
                  preferred_element_type=jnp.float32) + b2_ref[...]   # (TB*L, O)

    # ---------------- attention head in (O, L) layout ----------------
    # Single transpose per tile; every contraction below is (M,K)@(K,N).
    fcT = jnp.swapaxes(fc2.reshape(TB, L, O), 1, 2)          # (TB, O, L)
    fcT2 = fcT.reshape(TB * O, L)                            # rows = (b, o)
    meanT = jnp.mean(fcT2, axis=-1, keepdims=True)           # (TB*O, 1) mean_t

    # cat([fc, mean], time).T @ W1  ==  fcT2 @ W1[:L]  +  mean * W1[L]
    a = jnp.dot(fcT2.astype(aw1m_ref.dtype), aw1m_ref[...],
                preferred_element_type=jnp.float32)
    a = a + meanT * aw1u_ref[...] + ab1_ref[...]
    a = jnp.maximum(a, 0.0)                                  # (TB*O, 3H)

    w = jnp.dot(a.astype(aw2_ref.dtype), aw2_ref[...],
                preferred_element_type=jnp.float32) + ab2_ref[...]   # (TB*O, L)

    # softmax over the time axis (lane axis here) == PyTorch softmax(dim=2)
    w = w - jnp.max(w, axis=-1, keepdims=True)
    e = jnp.exp(w)
    inv_den = pl.reciprocal(jnp.sum(e, axis=-1, keepdims=True), approx=True)
    sw = e * inv_den                                         # (TB*O, L)

    # logits[b, o] = sum_t fc[b, t, o] * sw[b, o, t]
    logits = jnp.sum((sw * fcT2).reshape(TB, O, L), axis=-1)  # (TB, O)
    o_ref[...] = logits[:, None, :].astype(o_ref.dtype)       # (TB, 1, O)


def _pick_batch_tile(B, max_tile=16):
    """Largest divisor of B that is <= max_tile while keeping >= 2 grid steps
    (so both v7x TensorCores get work when B >= 2)."""
    best = 1
    for t in range(1, min(B, max_tile) + 1):
        if B % t == 0 and (B // t >= 2 or B == 1):
            best = t
    return best


def attention_mlp_forward(x, fc_params, attn_params, *,
                          batch_tile=None, compute_dtype=jnp.float32):
    """x: (B, L, F) float32 -> logits (B, O) float32.

    compute_dtype: dtype used for matmul operands (weights + activations at the
    dot); accumulation is always f32.  Use jnp.bfloat16 on v6e/v7x.
    """
    B, L, F = x.shape
    H = fc_params["w1"].shape[1]
    O = fc_params["w2"].shape[1]
    H3 = attn_params["w1"].shape[1]
    assert attn_params["w1"].shape[0] == L + 1

    if batch_tile is None:
        batch_tile = _pick_batch_tile(B)
    assert B % batch_tile == 0
    grid = (B // batch_tile,)

    cd = jnp.dtype(compute_dtype)
    w1 = fc_params["w1"].astype(cd)                 # (F, H)
    w2 = fc_params["w2"].astype(cd)                 # (H, O)
    aw1_main = attn_params["w1"][:L].astype(cd)     # (L, 3H)
    aw1_mean = attn_params["w1"][L:L + 1]           # (1, 3H) stays f32 (VPU term)
    aw2 = attn_params["w2"].astype(cd)              # (3H, L)
    ab2 = attn_params["b2"].reshape(1, L)           # lane-major bias row

    def full(shape):
        return pl.BlockSpec(shape, lambda b: (0, 0))

    kernel = functools.partial(_fused_kernel, tb=batch_tile, seq_len=L)

    out = pl.pallas_call(
        kernel,
        out_shape=jax.ShapeDtypeStruct((B, 1, O), jnp.float32),
        grid=grid,
        in_specs=[
            pl.BlockSpec((batch_tile, L, F), lambda b: (b, 0, 0)),   # x
            full((1, F)), full((1, F)),                              # LN1 g / b
            full((F, H)), full((1, H)),                              # W1 / b1
            full((1, H)), full((1, H)),                              # LN2 g / b
            full((H, O)), full((1, O)),                              # W2 / b2
            full((L, H3)), full((1, H3)), full((1, H3)),             # attn W1 main/mean, b1
            full((H3, L)), full((1, L)),                             # attn W2 / b2
        ],
        out_specs=pl.BlockSpec((batch_tile, 1, O), lambda b: (b, 0, 0)),
        compiler_params=pltpu.CompilerParams(
            dimension_semantics=("parallel",),
            vmem_limit_bytes=32 * 1024 * 1024),
    )(x,
      fc_params["g1"], fc_params["be1"], w1, fc_params["b1"],
      fc_params["g2"], fc_params["be2"], w2, fc_params["b2"],
      aw1_main, aw1_mean, attn_params["b1"], aw2, ab2)
    return out[:, 0, :]                                              # (B, O)


# -----------------------------------------------------------------------------
# Deterministic synthetic parameters + pure-JAX reference for verification.
# -----------------------------------------------------------------------------
def init_params(key, F, L, H, O):
    ks = jax.random.split(key, 10)
    s = 0.1
    fc_params = dict(
        g1=jnp.ones((1, F), jnp.float32),
        be1=jnp.zeros((1, F), jnp.float32),
        w1=jax.random.normal(ks[0], (F, H), jnp.float32) * s,
        b1=jax.random.normal(ks[1], (1, H), jnp.float32) * s,
        g2=1.0 + 0.05 * jax.random.normal(ks[2], (1, H), jnp.float32),
        be2=0.05 * jax.random.normal(ks[3], (1, H), jnp.float32),
        w2=jax.random.normal(ks[4], (H, O), jnp.float32) * s,
        b2=jax.random.normal(ks[5], (1, O), jnp.float32) * s,
    )
    attn_params = dict(
        w1=jax.random.normal(ks[6], (L + 1, 3 * H), jnp.float32) * s,
        b1=jax.random.normal(ks[7], (1, 3 * H), jnp.float32) * s,
        w2=jax.random.normal(ks[8], (3 * H, L), jnp.float32) * s,
        b2=jax.random.normal(ks[9], (L,), jnp.float32) * s,
    )
    return fc_params, attn_params


def reference_forward(x, fc_params, attn_params):
    B, L, F = x.shape

    def ln(v, g, b):
        mu = v.mean(-1, keepdims=True)
        var = ((v - mu) ** 2).mean(-1, keepdims=True)
        return (v - mu) / jnp.sqrt(var + LN_EPS) * g + b

    h = ln(x.reshape(-1, F), fc_params["g1"][0], fc_params["be1"][0])
    h = jnp.maximum(h @ fc_params["w1"] + fc_params["b1"][0], 0.0)
    h = ln(h, fc_params["g2"][0], fc_params["be2"][0])
    fc_out = (h @ fc_params["w2"] + fc_params["b2"][0]).reshape(B, L, -1)

    mean = fc_out.mean(axis=1, keepdims=True)                  # (B,1,O)
    cat = jnp.concatenate([fc_out, mean], axis=1)              # (B,L+1,O)
    r = jnp.swapaxes(cat, 1, 2)                                # (B,O,L+1)
    a = jnp.maximum(r @ attn_params["w1"] + attn_params["b1"][0], 0.0)
    w = a @ attn_params["w2"] + attn_params["b2"]              # (B,O,L)
    nw = jnp.swapaxes(jax.nn.softmax(w, axis=2), 1, 2)         # (B,L,O)
    return jnp.einsum('ijk,ijk->ik', fc_out, nw)               # (B,O)


if __name__ == "__main__":
    # batch, time_length, input, hidden, output
    B, L, F, H, O = 4, 8, 16, 32, 16
    key = jax.random.PRNGKey(0)
    kx, kp = jax.random.split(key)
    x = jax.random.normal(kx, (B, L, F), jnp.float32)
    fc_params, attn_params = init_params(kp, F, L, H, O)

    ref = reference_forward(x, fc_params, attn_params)

    # f32 matmul path (portable; tight check).
    logits = attention_mlp_forward(x, fc_params, attn_params,
                                   compute_dtype=jnp.float32)
    logits = jax.block_until_ready(logits)
    assert logits.shape == (B, O), logits.shape
    err = float(jnp.max(jnp.abs(logits - ref)))
    assert jnp.allclose(logits, ref, atol=5e-3, rtol=5e-3), f"f32 max abs err {err}"

    # bf16 matmul path (recommended on v6e/v7x; f32 accumulation + f32 LN/softmax).
    logits_bf16 = attention_mlp_forward(x, fc_params, attn_params,
                                        compute_dtype=jnp.bfloat16)
    logits_bf16 = jax.block_until_ready(logits_bf16)
    err_bf16 = float(jnp.max(jnp.abs(logits_bf16 - ref)))
    assert jnp.allclose(logits_bf16, ref, atol=5e-2, rtol=5e-2), \
        f"bf16 max abs err {err_bf16}"

    print("KERNEL_OK")
</pallas_src>

<mosaic_0001>
module attributes {stable_mosaic.version = 11 : i64} {
  func.func @_fused_kernel(%arg0: i32, %arg1: memref<2x8x16xf32, #tpu.memory_space<vmem>>, %arg2: memref<1x16xf32, #tpu.memory_space<vmem>>, %arg3: memref<1x16xf32, #tpu.memory_space<vmem>>, %arg4: memref<16x32xf32, #tpu.memory_space<vmem>>, %arg5: memref<1x32xf32, #tpu.memory_space<vmem>>, %arg6: memref<1x32xf32, #tpu.memory_space<vmem>>, %arg7: memref<1x32xf32, #tpu.memory_space<vmem>>, %arg8: memref<32x16xf32, #tpu.memory_space<vmem>>, %arg9: memref<1x16xf32, #tpu.memory_space<vmem>>, %arg10: memref<8x96xf32, #tpu.memory_space<vmem>>, %arg11: memref<1x96xf32, #tpu.memory_space<vmem>>, %arg12: memref<1x96xf32, #tpu.memory_space<vmem>>, %arg13: memref<96x8xf32, #tpu.memory_space<vmem>>, %arg14: memref<1x8xf32, #tpu.memory_space<vmem>>, %arg15: memref<2x1x16xf32, #tpu.memory_space<vmem>>) attributes {dimension_semantics = [#tpu.dimension_semantics<parallel>], iteration_bounds = array<i64: 2>, scalar_prefetch = 0 : i64, scratch_operands = 0 : i64, tpu.core_type = #tpu.core_type<tc>, window_params = [{transform_indices = @transform_0, window_bounds = array<i64: 2, 8, 16>}, {pipeline_mode = #tpu.pipeline_mode<synchronous>, transform_indices = @transform_1, window_bounds = array<i64: 1, 16>}, {pipeline_mode = #tpu.pipeline_mode<synchronous>, transform_indices = @transform_2, window_bounds = array<i64: 1, 16>}, {pipeline_mode = #tpu.pipeline_mode<synchronous>, transform_indices = @transform_3, window_bounds = array<i64: 16, 32>}, {pipeline_mode = #tpu.pipeline_mode<synchronous>, transform_indices = @transform_4, window_bounds = array<i64: 1, 32>}, {pipeline_mode = #tpu.pipeline_mode<synchronous>, transform_indices = @transform_5, window_bounds = array<i64: 1, 32>}, {pipeline_mode = #tpu.pipeline_mode<synchronous>, transform_indices = @transform_6, window_bounds = array<i64: 1, 32>}, {pipeline_mode = #tpu.pipeline_mode<synchronous>, transform_indices = @transform_7, window_bounds = array<i64: 32, 16>}, {pipeline_mode = #tpu.pipeline_mode<synchronous>, transform_indices = @transform_8, window_bounds = array<i64: 1, 16>}, {pipeline_mode = #tpu.pipeline_mode<synchronous>, transform_indices = @transform_9, window_bounds = array<i64: 8, 96>}, {pipeline_mode = #tpu.pipeline_mode<synchronous>, transform_indices = @transform_10, window_bounds = array<i64: 1, 96>}, {pipeline_mode = #tpu.pipeline_mode<synchronous>, transform_indices = @transform_11, window_bounds = array<i64: 1, 96>}, {pipeline_mode = #tpu.pipeline_mode<synchronous>, transform_indices = @transform_12, window_bounds = array<i64: 96, 8>}, {pipeline_mode = #tpu.pipeline_mode<synchronous>, transform_indices = @transform_13, window_bounds = array<i64: 1, 8>}, {transform_indices = @transform_14, window_bounds = array<i64: 2, 1, 16>}]} {
    %c0 = arith.constant 0 : index
    %c0_0 = arith.constant 0 : index
    %c0_1 = arith.constant 0 : index
    %0 = vector.load %arg1[%c0, %c0_0, %c0_1] : memref<2x8x16xf32, #tpu.memory_space<vmem>>, vector<2x8x16xf32>
    %1 = vector.shape_cast %0 : vector<2x8x16xf32> to vector<16x16xf32>
    %c0_2 = arith.constant 0 : index
    %c0_3 = arith.constant 0 : index
    %2 = vector.load %arg2[%c0_2, %c0_3] : memref<1x16xf32, #tpu.memory_space<vmem>>, vector<1x16xf32>
    %c0_4 = arith.constant 0 : index
    %c0_5 = arith.constant 0 : index
    %3 = vector.load %arg3[%c0_4, %c0_5] : memref<1x16xf32, #tpu.memory_space<vmem>>, vector<1x16xf32>
    %cst = arith.constant dense<0.000000e+00> : vector<16xf32>
    %4 = vector.multi_reduction <add>, %1, %cst [1] : vector<16x16xf32> to vector<16xf32>
    %5 = vector.shape_cast %4 : vector<16xf32> to vector<16x1xf32>
    %cst_6 = arith.constant 1.600000e+01 : f32
    %6 = vector.broadcast %cst_6 : f32 to vector<16x1xf32>
    %7 = arith.divf %5, %6 : vector<16x1xf32>
    %8 = vector.broadcast %7 : vector<16x1xf32> to vector<16x16xf32>
    %9 = arith.subf %1, %8 : vector<16x16xf32>
    %10 = arith.mulf %9, %9 : vector<16x16xf32>
    %cst_7 = arith.constant dense<0.000000e+00> : vector<16xf32>
    %11 = vector.multi_reduction <add>, %10, %cst_7 [1] : vector<16x16xf32> to vector<16xf32>
    %12 = vector.shape_cast %11 : vector<16xf32> to vector<16x1xf32>
    %cst_8 = arith.constant 1.600000e+01 : f32
    %13 = vector.broadcast %cst_8 : f32 to vector<16x1xf32>
    %14 = arith.divf %12, %13 : vector<16x1xf32>
    %cst_9 = arith.constant 9.99999974E-6 : f32
    %15 = vector.broadcast %cst_9 : f32 to vector<16x1xf32>
    %16 = arith.addf %14, %15 : vector<16x1xf32>
    %17 = math.rsqrt %16 : vector<16x1xf32>
    %18 = vector.broadcast %17 : vector<16x1xf32> to vector<16x16xf32>
    %19 = arith.mulf %9, %18 : vector<16x16xf32>
    %20 = vector.broadcast %2 : vector<1x16xf32> to vector<16x16xf32>
    %21 = arith.mulf %19, %20 : vector<16x16xf32>
    %22 = vector.broadcast %3 : vector<1x16xf32> to vector<16x16xf32>
    %23 = arith.addf %21, %22 : vector<16x16xf32>
    %c0_10 = arith.constant 0 : index
    %c0_11 = arith.constant 0 : index
    %24 = vector.load %arg4[%c0_10, %c0_11] : memref<16x32xf32, #tpu.memory_space<vmem>>, vector<16x32xf32>
    %cst_12 = arith.constant dense<0.000000e+00> : vector<16x32xf32>
    %25 = tpu.matmul %23, %24, %cst_12 {dimension_numbers = #tpu.dot_dimension_numbers<[1], [0], [0], [1], [0, 0, 1, 1], [], []>} : vector<16x16xf32>, vector<16x32xf32>, vector<16x32xf32> -> vector<16x32xf32>
    %c0_13 = arith.constant 0 : index
    %c0_14 = arith.constant 0 : index
    %26 = vector.load %arg5[%c0_13, %c0_14] : memref<1x32xf32, #tpu.memory_space<vmem>>, vector<1x32xf32>
    %27 = vector.broadcast %26 : vector<1x32xf32> to vector<16x32xf32>
    %28 = arith.addf %25, %27 : vector<16x32xf32>
    %cst_15 = arith.constant 0.000000e+00 : f32
    %29 = vector.broadcast %cst_15 : f32 to vector<16x32xf32>
    %30 = arith.maximumf %28, %29 : vector<16x32xf32>
    %c0_16 = arith.constant 0 : index
    %c0_17 = arith.constant 0 : index
    %31 = vector.load %arg6[%c0_16, %c0_17] : memref<1x32xf32, #tpu.memory_space<vmem>>, vector<1x32xf32>
    %c0_18 = arith.constant 0 : index
    %c0_19 = arith.constant 0 : index
    %32 = vector.load %arg7[%c0_18, %c0_19] : memref<1x32xf32, #tpu.memory_space<vmem>>, vector<1x32xf32>
    %cst_20 = arith.constant dense<0.000000e+00> : vector<16xf32>
    %33 = vector.multi_reduction <add>, %30, %cst_20 [1] : vector<16x32xf32> to vector<16xf32>
    %34 = vector.shape_cast %33 : vector<16xf32> to vector<16x1xf32>
    %cst_21 = arith.constant 3.200000e+01 : f32
    %35 = vector.broadcast %cst_21 : f32 to vector<16x1xf32>
    %36 = arith.divf %34, %35 : vector<16x1xf32>
    %37 = vector.broadcast %36 : vector<16x1xf32> to vector<16x32xf32>
    %38 = arith.subf %30, %37 : vector<16x32xf32>
    %39 = arith.mulf %38, %38 : vector<16x32xf32>
    %cst_22 = arith.constant dense<0.000000e+00> : vector<16xf32>
    %40 = vector.multi_reduction <add>, %39, %cst_22 [1] : vector<16x32xf32> to vector<16xf32>
    %41 = vector.shape_cast %40 : vector<16xf32> to vector<16x1xf32>
    %cst_23 = arith.constant 3.200000e+01 : f32
    %42 = vector.broadcast %cst_23 : f32 to vector<16x1xf32>
    %43 = arith.divf %41, %42 : vector<16x1xf32>
    %cst_24 = arith.constant 9.99999974E-6 : f32
    %44 = vector.broadcast %cst_24 : f32 to vector<16x1xf32>
    %45 = arith.addf %43, %44 : vector<16x1xf32>
    %46 = math.rsqrt %45 : vector<16x1xf32>
    %47 = vector.broadcast %46 : vector<16x1xf32> to vector<16x32xf32>
    %48 = arith.mulf %38, %47 : vector<16x32xf32>
    %49 = vector.broadcast %31 : vector<1x32xf32> to vector<16x32xf32>
    %50 = arith.mulf %48, %49 : vector<16x32xf32>
    %51 = vector.broadcast %32 : vector<1x32xf32> to vector<16x32xf32>
    %52 = arith.addf %50, %51 : vector<16x32xf32>
    %c0_25 = arith.constant 0 : index
    %c0_26 = arith.constant 0 : index
    %53 = vector.load %arg8[%c0_25, %c0_26] : memref<32x16xf32, #tpu.memory_space<vmem>>, vector<32x16xf32>
    %cst_27 = arith.constant dense<0.000000e+00> : vector<16x16xf32>
    %54 = tpu.matmul %52, %53, %cst_27 {dimension_numbers = #tpu.dot_dimension_numbers<[1], [0], [0], [1], [0, 0, 1, 1], [], []>} : vector<16x32xf32>, vector<32x16xf32>, vector<16x16xf32> -> vector<16x16xf32>
    %c0_28 = arith.constant 0 : index
    %c0_29 = arith.constant 0 : index
    %55 = vector.load %arg9[%c0_28, %c0_29] : memref<1x16xf32, #tpu.memory_space<vmem>>, vector<1x16xf32>
    %56 = vector.broadcast %55 : vector<1x16xf32> to vector<16x16xf32>
    %57 = arith.addf %54, %56 : vector<16x16xf32>
    %58 = vector.shape_cast %57 : vector<16x16xf32> to vector<2x8x16xf32>
    %59 = tpu.transpose %58, [0, 2, 1] : vector<2x8x16xf32> -> vector<2x16x8xf32>
    %60 = vector.shape_cast %59 : vector<2x16x8xf32> to vector<32x8xf32>
    %cst_30 = arith.constant dense<0.000000e+00> : vector<32xf32>
    %61 = vector.multi_reduction <add>, %60, %cst_30 [1] : vector<32x8xf32> to vector<32xf32>
    %62 = vector.shape_cast %61 : vector<32xf32> to vector<32x1xf32>
    %cst_31 = arith.constant 8.000000e+00 : f32
    %63 = vector.broadcast %cst_31 : f32 to vector<32x1xf32>
    %64 = arith.divf %62, %63 : vector<32x1xf32>
    %c0_32 = arith.constant 0 : index
    %c0_33 = arith.constant 0 : index
    %65 = vector.load %arg10[%c0_32, %c0_33] : memref<8x96xf32, #tpu.memory_space<vmem>>, vector<8x96xf32>
    %cst_34 = arith.constant dense<0.000000e+00> : vector<32x96xf32>
    %66 = tpu.matmul %60, %65, %cst_34 {dimension_numbers = #tpu.dot_dimension_numbers<[1], [0], [0], [1], [0, 0, 1, 1], [], []>} : vector<32x8xf32>, vector<8x96xf32>, vector<32x96xf32> -> vector<32x96xf32>
    %c0_35 = arith.constant 0 : index
    %c0_36 = arith.constant 0 : index
    %67 = vector.load %arg11[%c0_35, %c0_36] : memref<1x96xf32, #tpu.memory_space<vmem>>, vector<1x96xf32>
    %68 = vector.broadcast %64 : vector<32x1xf32> to vector<32x96xf32>
    %69 = vector.broadcast %67 : vector<1x96xf32> to vector<32x96xf32>
    %70 = arith.mulf %68, %69 : vector<32x96xf32>
    %71 = arith.addf %66, %70 : vector<32x96xf32>
    %c0_37 = arith.constant 0 : index
    %c0_38 = arith.constant 0 : index
    %72 = vector.load %arg12[%c0_37, %c0_38] : memref<1x96xf32, #tpu.memory_space<vmem>>, vector<1x96xf32>
    %73 = vector.broadcast %72 : vector<1x96xf32> to vector<32x96xf32>
    %74 = arith.addf %71, %73 : vector<32x96xf32>
    %cst_39 = arith.constant 0.000000e+00 : f32
    %75 = vector.broadcast %cst_39 : f32 to vector<32x96xf32>
    %76 = arith.maximumf %74, %75 : vector<32x96xf32>
    %c0_40 = arith.constant 0 : index
    %c0_41 = arith.constant 0 : index
    %77 = vector.load %arg13[%c0_40, %c0_41] : memref<96x8xf32, #tpu.memory_space<vmem>>, vector<96x8xf32>
    %cst_42 = arith.constant dense<0.000000e+00> : vector<32x8xf32>
    %78 = tpu.matmul %76, %77, %cst_42 {dimension_numbers = #tpu.dot_dimension_numbers<[1], [0], [0], [1], [0, 0, 1, 1], [], []>} : vector<32x96xf32>, vector<96x8xf32>, vector<32x8xf32> -> vector<32x8xf32>
    %c0_43 = arith.constant 0 : index
    %c0_44 = arith.constant 0 : index
    %79 = vector.load %arg14[%c0_43, %c0_44] : memref<1x8xf32, #tpu.memory_space<vmem>>, vector<1x8xf32>
    %80 = vector.broadcast %79 : vector<1x8xf32> to vector<32x8xf32>
    %81 = arith.addf %78, %80 : vector<32x8xf32>
    %cst_45 = arith.constant dense<0xFF800000> : vector<32xf32>
    %82 = vector.multi_reduction <maximumf>, %81, %cst_45 [1] : vector<32x8xf32> to vector<32xf32>
    %83 = vector.shape_cast %82 : vector<32xf32> to vector<32x1xf32>
    %84 = vector.broadcast %83 : vector<32x1xf32> to vector<32x8xf32>
    %85 = arith.subf %81, %84 : vector<32x8xf32>
    %86 = math.exp %85 : vector<32x8xf32>
    %cst_46 = arith.constant dense<0.000000e+00> : vector<32xf32>
    %87 = vector.multi_reduction <add>, %86, %cst_46 [1] : vector<32x8xf32> to vector<32xf32>
    %88 = vector.shape_cast %87 : vector<32xf32> to vector<32x1xf32>
    %89 = tpu.reciprocal %88 {approx = true} : vector<32x1xf32> -> vector<32x1xf32>
    %90 = vector.broadcast %89 : vector<32x1xf32> to vector<32x8xf32>
    %91 = arith.mulf %86, %90 : vector<32x8xf32>
    %92 = arith.mulf %91, %60 : vector<32x8xf32>
    %93 = vector.shape_cast %92 : vector<32x8xf32> to vector<2x16x8xf32>
    %cst_47 = arith.constant dense<0.000000e+00> : vector<2x16xf32>
    %94 = vector.multi_reduction <add>, %93, %cst_47 [2] : vector<2x16x8xf32> to vector<2x16xf32>
    %95 = vector.shape_cast %94 : vector<2x16xf32> to vector<2x1x16xf32>
    %c0_48 = arith.constant 0 : index
    %c0_49 = arith.constant 0 : index
    %c0_50 = arith.constant 0 : index
    %96 = vector.load %arg15[%c0_48, %c0_49, %c0_50] : memref<2x1x16xf32, #tpu.memory_space<vmem>>, vector<2x1x16xf32>
    tpu.vector_store %arg15[%c0_48, %c0_49, %c0_50], %95 {strides = array<i32>} : memref<2x1x16xf32, #tpu.memory_space<vmem>>, vector<2x1x16xf32>,
    return
  }
  func.func @transform_0(%arg0: i32) -> (i32, i32, i32) {
    %c0_i32 = arith.constant 0 : i32
    %c0_i32_0 = arith.constant 0 : i32
    %c0_i32_1 = arith.constant 0 : i32
    return %arg0, %c0_i32, %c0_i32_0 : i32, i32, i32
  }
  func.func @transform_1(%arg0: i32) -> (i32, i32) {
    %c0_i32 = arith.constant 0 : i32
    %c0_i32_0 = arith.constant 0 : i32
    %c0_i32_1 = arith.constant 0 : i32
    return %c0_i32, %c0_i32_0 : i32, i32
  }
  func.func @transform_2(%arg0: i32) -> (i32, i32) {
    %c0_i32 = arith.constant 0 : i32
    %c0_i32_0 = arith.constant 0 : i32
    %c0_i32_1 = arith.constant 0 : i32
    return %c0_i32, %c0_i32_0 : i32, i32
  }
  func.func @transform_3(%arg0: i32) -> (i32, i32) {
    %c0_i32 = arith.constant 0 : i32
    %c0_i32_0 = arith.constant 0 : i32
    %c0_i32_1 = arith.constant 0 : i32
    return %c0_i32, %c0_i32_0 : i32, i32
  }
  func.func @transform_4(%arg0: i32) -> (i32, i32) {
    %c0_i32 = arith.constant 0 : i32
    %c0_i32_0 = arith.constant 0 : i32
    %c0_i32_1 = arith.constant 0 : i32
    return %c0_i32, %c0_i32_0 : i32, i32
  }
  func.func @transform_5(%arg0: i32) -> (i32, i32) {
    %c0_i32 = arith.constant 0 : i32
    %c0_i32_0 = arith.constant 0 : i32
    %c0_i32_1 = arith.constant 0 : i32
    return %c0_i32, %c0_i32_0 : i32, i32
  }
  func.func @transform_6(%arg0: i32) -> (i32, i32) {
    %c0_i32 = arith.constant 0 : i32
    %c0_i32_0 = arith.constant 0 : i32
    %c0_i32_1 = arith.constant 0 : i32
    return %c0_i32, %c0_i32_0 : i32, i32
  }
  func.func @transform_7(%arg0: i32) -> (i32, i32) {
    %c0_i32 = arith.constant 0 : i32
    %c0_i32_0 = arith.constant 0 : i32
    %c0_i32_1 = arith.constant 0 : i32
    return %c0_i32, %c0_i32_0 : i32, i32
  }
  func.func @transform_8(%arg0: i32) -> (i32, i32) {
    %c0_i32 = arith.constant 0 : i32
    %c0_i32_0 = arith.constant 0 : i32
    %c0_i32_1 = arith.constant 0 : i32
    return %c0_i32, %c0_i32_0 : i32, i32
  }
  func.func @transform_9(%arg0: i32) -> (i32, i32) {
    %c0_i32 = arith.constant 0 : i32
    %c0_i32_0 = arith.constant 0 : i32
    %c0_i32_1 = arith.constant 0 : i32
    return %c0_i32, %c0_i32_0 : i32, i32
  }
  func.func @transform_10(%arg0: i32) -> (i32, i32) {
    %c0_i32 = arith.constant 0 : i32
    %c0_i32_0 = arith.constant 0 : i32
    %c0_i32_1 = arith.constant 0 : i32
    return %c0_i32, %c0_i32_0 : i32, i32
  }
  func.func @transform_11(%arg0: i32) -> (i32, i32) {
    %c0_i32 = arith.constant 0 : i32
    %c0_i32_0 = arith.constant 0 : i32
    %c0_i32_1 = arith.constant 0 : i32
    return %c0_i32, %c0_i32_0 : i32, i32
  }
  func.func @transform_12(%arg0: i32) -> (i32, i32) {
    %c0_i32 = arith.constant 0 : i32
    %c0_i32_0 = arith.constant 0 : i32
    %c0_i32_1 = arith.constant 0 : i32
    return %c0_i32, %c0_i32_0 : i32, i32
  }
  func.func @transform_13(%arg0: i32) -> (i32, i32) {
    %c0_i32 = arith.constant 0 : i32
    %c0_i32_0 = arith.constant 0 : i32
    %c0_i32_1 = arith.constant 0 : i32
    return %c0_i32, %c0_i32_0 : i32, i32
  }
  func.func @transform_14(%arg0: i32) -> (i32, i32, i32) {
    %c0_i32 = arith.constant 0 : i32
    %c0_i32_0 = arith.constant 0 : i32
    %c0_i32_1 = arith.constant 0 : i32
    return %arg0, %c0_i32, %c0_i32_0 : i32, i32, i32
  }
}

</mosaic_0001>

<bundles_post_ra>
// kernel: tpu_custom_call.1
= control target key start
LH: loop header
LB: loop body
LE: loop exit
PB: predicated region body
PF: predicated region fallthrough
CT: control target
= control target key end

     0   :  { %s1840_s0 = inlined_call_operand.vmem [shape: f32[4,8,16], index: 0, kind: input, shape index: {}]   ;;  %s1841_s1 = inlined_call_operand.vmem [shape: f32[1,16], index: 1, kind: input, shape index: {}]   ;;  %s1842_s2 = inlined_call_operand.vmem [shape: f32[1,16], index: 2, kind: input, shape index: {}]   ;;  %s1843_s3 = inlined_call_operand.vmem [shape: f32[16,32], index: 3, kind: input, shape index: {}]   ;;  %s1844_s4 = inlined_call_operand.vmem [shape: f32[1,32], index: 4, kind: input, shape index: {}]   ;;  %s1845_s5 = inlined_call_operand.vmem [shape: f32[1,32], index: 5, kind: input, shape index: {}]   ;;  %s1846_s6 = inlined_call_operand.vmem [shape: f32[1,32], index: 6, kind: input, shape index: {}]   ;;  %s1847_s7 = inlined_call_operand.vmem [shape: f32[32,16], index: 7, kind: input, shape index: {}]   ;;  %s1848_s8 = inlined_call_operand.vmem [shape: f32[1,16], index: 8, kind: input, shape index: {}]   ;;  %s1849_s9 = inlined_call_operand.vmem [shape: f32[8,96], index: 9, kind: input, shape index: {}]   ;;  %s1850_s10 = inlined_call_operand.vmem [shape: f32[1,96], index: 10, kind: input, shape index: {}]   ;;  %s1851_s11 = inlined_call_operand.vmem [shape: f32[1,96], index: 11, kind: input, shape index: {}]   ;;  %s1852_s12 = inlined_call_operand.vmem [shape: f32[96,8], index: 12, kind: input, shape index: {}]   ;;  %s1853_s13 = inlined_call_operand.vmem [shape: f32[1,8], index: 13, kind: input, shape index: {}]   ;;  %s1854_s14 = inlined_call_operand.hbm [shape: f32[4,1,16], index: 14, kind: output, shape index: {}]  }
   0x1   :  { %1855 = sst [smem:[#allocation5_spill]] %s1840_s0 }
   0x2   :  { %1856 = sst [smem:[#allocation6_spill]] %s1841_s1 }
   0x3   :  { %1857 = sst [smem:[#allocation7_spill]] %s1842_s2 }
   0x4   :  { %19 = vsyncpa [#allocation3], 0 }
   0x5   :  { %21 = vsyncpa [#allocation3 + $0x1], 0  ;;  %s1602_s29 = smov 0   ;;  %s1604_s30 = smov 0  }
   0x6   :  { %s1606_s15 = smov 0   ;;  %s1608_s16 = smov 0  }
   0x7 LB: > { %s1623_s17 = sadd.s32 4294967295, %s1522_s16   ;;  %s1237_s18 = sadd.s32 4294967294, %s1522_s16   ;;  %s1522_s16 = sphi %s1608_s16, %s1866_s16   ;;  %s1518_s15 = sphi %s1606_s15, %s1865_s15   ;;  %s1514_s30 = sphi %s1604_s30, %s1864_s30   ;;  %s1510_s29 = sphi %s1602_s29, %s1863_s29  }
   0x8   : > { %s1627_s19 = sadd.s32 1, %s1522_s16   ;;  %s333_s20 = sadd.s32 1, %s1518_s15 }
   0x9   : > { %s330_s21 = ssub.s32 %s1522_s16, %s1627_s19  ;;  %p343_p0 = scmp.ne.s32.totalorder %s1518_s15, %s1514_s30 }
   0xa   : > { %p331_p1 = scmp.eq.s32.totalorder %s330_s21, 0  ;;  %p344_p2 = scmp.eq.s32.totalorder %s1623_s17, 1 }
   0xb   : > { %p349_p3 = scmp.ne.s32.totalorder %s1514_s30, %s1510_s29  ;;  %p350_p4 = scmp.eq.s32.totalorder %s1237_s18, 1 }
   0xc   : > { %s1638_s22 = scalar_select %p331_p1, %s1518_s15, %s333_s20  }
   0xd   : > { %p1640_p5 = por %p344_p2, %p343_p0  ;;  %p1644_p6 = por %p350_p4, %p349_p3 }
   0xe   : > { %p1240_p7 = scmp.ge.s32.totalorder %s1522_s16, 1  ;;  %p416_p8 = scmp.lt.s32.totalorder %s1522_s16, 3 }
  0x10   : > { %p417_p9 = pnand %p1240_p7, %p416_p8 }
  0x11   : > { %s1242_s25 = sshll.u32 (!%p417_p9), %s1623_s17, 1  ;;  %vm473_vm0 = vcmask (!%p417_p9), 130048   ;;  %s1860_s0 = sld [smem:[#allocation5_spill]] (!%p417_p9)  ;;  %v517_v14 = vld [vmem:[%s1843_s3] sm:$0xff] (!%p417_p9)  ;;  %v518_v15 = vld [vmem:[%s1843_s3 + $0x8] sm:$0xff] (!%p417_p9)  ;;  %vm611_vm1 = vcmask (!%p417_p9), 261120  }
  0x12   : > { %420 = sbr.rel (%p417_p9) target bundleno = 2141 (0x85d), region = 76  ;;  %p463_p10 = scmp.lt.s32.totalorder (!%p417_p9), %s1242_s25, 3  ;;  %v1358_v16 = vpack.c.bf16 (!%p417_p9), %v518_v15, %v517_v14  ;;  %v1246_v33 = vld [vmem:[%s1844_s4] ss:$0 sm:$0xff] (!%p417_p9)  ;;  %v656_v53 = vld [vmem:[%s1847_s7 + $0x8] sm:$0xff] (!%p417_p9)  ;;  %v657_v55 = vld [vmem:[%s1847_s7 + $0x10] sm:$0xff] (!%p417_p9) }
  0x13   : > { %s1861_s1 = sld [smem:[#allocation6_spill]] (!%p417_p9)  ;;  %s1862_s2 = sld [smem:[#allocation7_spill]] (!%p417_p9)  ;;  %v655_v52 = vld [vmem:[%s1847_s7] sm:$0xff] (!%p417_p9)  ;;  %v658_v56 = vld [vmem:[%s1847_s7 + $0x18] sm:$0xff] (!%p417_p9)  ;;  %vm811_vm2 = vcmask (!%p417_p9), 64512   ;;  %vm972_vm3 = vcmask (!%p417_p9), 785408  }
  0x14   : > { %1359 = vmatprep.subr.bf16.mxu1 (!%p417_p9), %v1358_v16  ;;  %v1362_v54 = vpack.c.bf16 (!%p417_p9), %v656_v53, %v655_v52  ;;  %v1366_v57 = vpack.c.bf16 (!%p417_p9), %v658_v56, %v657_v55  ;;  %v1259_v53 = vld [vmem:[%s1851_s11] ss:$0 sm:$0xff] (!%p417_p9)  ;;  %vm1145_vm4 = vcmask (!%p417_p9), 130112   ;;  %vm1158_vm5 = vcmask (!%p417_p9), 122880  }
  0x15   : > { %1361 = vmatpush3.bf16.msra.mxu1 (!%p417_p9), %v1358_v16 }
  0x16   : > { %1363 = vmatprep.subr.bf16.mxu1 (!%p417_p9), %v1362_v54 }
  0x19   : > { %s1868_s25 = smov (!%p463_p10, %s1242_s25), 3  ;;  %v1244_v24 = vld [vmem:[%s1861_s1] ss:$0 sm:$0xff] }
  0x1a   : > { %s1243_s26 = sshll.u32 %s1868_s25, 3  ;;  %v1245_v26 = vld [vmem:[%s1862_s2] ss:$0 sm:$0xff]  ;;  %s1524_s25 = smov [#allocation2]  }
  0x1b   : > { %s466_s18 = scalar_lea.vmem %s1860_s0, %s1243_s26  ;;  %s459_s26 = sand.u32 1, %s1514_s30  }
  0x1c   : > { %v469_v0 = vld [vmem:[%s466_s18] sm:$0xff]  ;;  %v470_v1 = vld [vmem:[%s466_s18 + $0x8] sm:$0xff]  ;;  %s1241_s27 = sshll.u32 %s459_s26, 1  ;;  %s1270_s18 = sshll.u32 %s1623_s17, 5 }
  0x1d   : > { %v474_v2 = vsel %vm473_vm0, %v469_v0, 0.0  ;;  %v477_v3 = vsel %vm473_vm0, %v470_v1, 0.0  ;;  %s461_s0 = scalar_lea.vmem [#allocation2], %s1241_s27  ;;  %s1795_s2 = scalar_lea.hbm %s1854_s14, %s1270_s18 }
  0x1e   : > { %475 = vadd.xlane.f32.xlu0 %v474_v2  ;;  %s1175_s28 = sshll.u32 %s461_s0, 4  ;;  %s1799_s21 = scalar_lea.sflag [#allocation3], %s459_s26  ;;  %s1797_s28 = int_to_ptr.vmem [resolvable:$true] %s1175_s28 }
  0x1f   : > { %s1460_s17 = scalar_lea.vmem %s1797_s28, 32  ;;  %s1464_s27 = sshll.u32 %s1524_s25, 4  ;;  %s1465_s27 = int_to_ptr.vmem [resolvable:$false] %s1464_s27 }
  0x20   : > { %p1461_p11 = scmp.ne.s32.totalorder %s1797_s28, %s1460_s17  ;;  %s1466_s20 = scalar_lea.vmem %s1465_s27, 64 }
  0x21   : > { %p1467_p0 = scmp.lt.s32.totalorder %s1797_s28, %s1465_s27  ;;  %p1468_p1 = scmp.lt.s32.totalorder %s1466_s20, %s1460_s17 }
  0x22   : > { %478 = vadd.xlane.f32.xlu0 %v477_v3  ;;  %p1462_p12 = pnand %p1461_p11, %p1640_p5 }
  0x23   : > { %p1469_p2 = por %p1468_p1, %p1467_p0 }
  0x24   : > { %p1463_p13 = pneg %p1462_p12 }
  0x26   : > { %p1470_p3 = pnand %p1469_p2, %p1463_p13 }
  0xab   : > { %v476_v4 = vpop.xlane.xlu0 %475 }
  0xac   : > { %v481_v5 = vmul.f32 0.0625, %v476_v4 }
  0xae   : > { %v483_v6 = vsub.f32 %v469_v0, %v481_v5  ;;  %v1250_v5 = vld [vmem:[%s1846_s6] ss:$0 sm:$0xff] }
  0xaf   : > { %v479_v7 = vpop.xlane.xlu0 %478 }
  0xb0   : > { %v482_v8 = vmul.f32 0.0625, %v479_v7  ;;  %v485_v9 = vmul.f32 %v483_v6, %v483_v6 }
  0xb2   : > { %v484_v10 = vsub.f32 %v470_v1, %v482_v8  ;;  %v487_v11 = vsel %vm473_vm0, %v485_v9, 0.0  ;;  %v1249_v1 = vld [vmem:[%s1845_s5] ss:$0 sm:$0xff] }
  0xb3   : > { %488 = vadd.xlane.f32.xlu1 %v487_v11  ;;  %v1251_v11 = vld [vmem:[%s1848_s8] ss:$0 sm:$0xff] }
  0xb4   : > { %v486_v12 = vmul.f32 %v484_v10, %v484_v10 }
  0xb6   : > { %v490_v13 = vsel %vm473_vm0, %v486_v12, 0.0 }
  0xb7   : > { %491 = vadd.xlane.f32.xlu1 %v490_v13 }
 0x140   : > { %v489_v17 = vpop.xlane.xlu1 %488 }
 0x141   : > { %v493_v18 = vmul.f32 0.0625, %v489_v17 }
 0x143   : > { %v495_v19 = vadd.f32 1e-05, %v493_v18 }
 0x144   : > { %v492_v20 = vpop.xlane.xlu1 %491 }
 0x145   : > { %1436 = vrsqrt.f32 %v495_v19  ;;  %v494_v21 = vmul.f32 0.0625, %v492_v20 }
 0x147   : > { %v496_v22 = vadd.f32 1e-05, %v494_v21 }
 0x149   : > { %1438 = vrsqrt.f32 %v496_v22 }
 0x14f   : > { %v1437_v23 = vpop.eup %1436 }
 0x150   : > { %v499_v25 = vmul.f32 %v1437_v23, %v483_v6 }
 0x152   : > { %v507_v27 = vmul.f32 %v1244_v24, %v499_v25  ;;  %v954_v25 = vld [vmem:[%s1852_s12 + $0x8] sm:$0xff] }
 0x153   : > { %v1439_v28 = vpop.eup %1438 }
 0x154   : > { %v500_v29 = vmul.f32 %v1439_v28, %v484_v10  ;;  %v515_v30 = vadd.f32 %v1245_v26, %v507_v27  ;;  %v829_v10 = vld [vmem:[%s1849_s9] sm:$0xff]  ;;  %v956_v28 = vld [vmem:[%s1852_s12 + $0x18] sm:$0xff] }
 0x156   : > { %v508_v31 = vmul.f32 %v1244_v24, %v500_v29  ;;  %1306 = vmatprep.mubr.msk.f32.mxu1 %vm473_vm0, %v515_v30  ;;  %v953_v24 = vld [vmem:[%s1852_s12] sm:$0xff] }
 0x157   : > { %v1370_v27 = vpack.c.bf16 %v954_v25, %v953_v24  ;;  %v957_v30 = vld [vmem:[%s1852_s12 + $0x20] sm:$0xff] }
 0x158   : > { %v516_v32 = vadd.f32 %v1245_v26, %v508_v31  ;;  %v955_v26 = vld [vmem:[%s1852_s12 + $0x10] sm:$0xff]  ;;  %v958_v31 = vld [vmem:[%s1852_s12 + $0x28] sm:$0xff] }
 0x159   : > { %v1374_v29 = vpack.c.bf16 %v956_v28, %v955_v26  ;;  %1371 = vmatprep.subr.bf16.mxu0 %v1370_v27 }
 0x15a   : > { %1307 = vmatmul.mubr.msk.f32.vlgmr.msra.gmra.mrb[0].mxu1 %vm473_vm0, %v516_v32  ;;  %1373 = vmatpush3.bf16.msra.mxu0 %v1370_v27  ;;  %v1378_v32 = vpack.c.bf16 %v958_v31, %v957_v30 }
 0x15b   : > { %1365 = vmatpush3.bf16.msra.mxu1 %v1362_v54  ;;  %1375 = vmatprep.subr.bf16.mxu0 %v1374_v29 }
 0x15c   : > { %1367 = vmatprep.subr.bf16.mxu1 %v1366_v57 }
 0x15e   : > { %1377 = vmatpush3.bf16.msra.mxu0 %v1374_v29 }
 0x15f   : > { %1369 = vmatpush3.bf16.msra.mxu1 %v1366_v57  ;;  %1379 = vmatprep.subr.bf16.mxu0 %v1378_v32 }
 0x160   : > { %1320 = vmatprep.subr.mxu1 %v829_v10 }
 0x162   : > { %1381 = vmatpush3.bf16.msra.mxu0 %v1378_v32 }
 0x22d   : > { %v1308_v34 = vpop.f32.mrb[0].mxu1 }
 0x22e   : > { %v604_v35 = vadd.f32 %v1308_v34, %v1246_v33  ;;  %v598_v36 = vpop.f32.mrb[1].mxu1  ;;  %v960_v34 = vld [vmem:[%s1852_s12 + $0x38] sm:$0xff] }
 0x22f   : > { %v599_v37 = vadd.f32 %v1246_v33, %v598_v36  ;;  %v959_v33 = vld [vmem:[%s1852_s12 + $0x30] sm:$0xff]  ;;  %v961_v36 = vld [vmem:[%s1852_s12 + $0x40] sm:$0xff] }
 0x230   : > { %v608_v38 = vmax.f32 %v604_v35, 0.0  ;;  %v1382_v35 = vpack.c.bf16 %v960_v34, %v959_v33 }
 0x231   : > { %v607_v39 = vmax.f32 %v599_v37, 0.0  ;;  %v962_v37 = vld [vmem:[%s1852_s12 + $0x48] sm:$0xff] }
 0x232   : > { %v615_v40 = vsel %vm611_vm1, %v608_v38, 0.0  ;;  %1383 = vmatprep.subr.bf16.mxu0 %v1382_v35 }
 0x233   : > { %616 = vadd.xlane.f32.xlu1 %v615_v40  ;;  %v612_v41 = vsel %vm611_vm1, %v607_v39, 0.0  ;;  %1385 = vmatpush3.bf16.msra.mxu0 %v1382_v35  ;;  %v964_v40 = vld [vmem:[%s1852_s12 + $0x58] sm:$0xff] }
 0x234   : > { %613 = vadd.xlane.f32.xlu0 %v612_v41 }
 0x2c0   : > { %v617_v42 = vpop.xlane.xlu1 %616 }
 0x2c1   : > { %v620_v43 = vmul.f32 0.03125, %v617_v42  ;;  %v614_v44 = vpop.xlane.xlu0 %613 }
 0x2c2   : > { %v619_v45 = vmul.f32 0.03125, %v614_v44 }
 0x2c3   : > { %v622_v46 = vsub.f32 %v608_v38, %v620_v43  ;;  %v1386_v38 = vpack.c.bf16 %v962_v37, %v961_v36 }
 0x2c4   : > { %v621_v47 = vsub.f32 %v607_v39, %v619_v45  ;;  %v963_v39 = vld [vmem:[%s1852_s12 + $0x50] sm:$0xff] }
 0x2c5   : > { %v624_v48 = vmul.f32 %v622_v46, %v622_v46  ;;  %1387 = vmatprep.subr.bf16.mxu0 %v1386_v38  ;;  %v1390_v41 = vpack.c.bf16 %v964_v40, %v963_v39 }
 0x2c6   : > { %v623_v49 = vmul.f32 %v621_v47, %v621_v47  ;;  %1389 = vmatpush3.bf16.msra.mxu0 %v1386_v38 }
 0x2c7   : > { %v628_v50 = vsel %vm611_vm1, %v624_v48, 0.0  ;;  %1391 = vmatprep.subr.bf16.mxu0 %v1390_v41  ;;  %v1254_v48 = vld [vmem:[%s1850_s10] ss:$0 sm:$0xff] }
 0x2c8   : > { %629 = vadd.xlane.f32.xlu1 %v628_v50  ;;  %v625_v51 = vsel %vm611_vm1, %v623_v49, 0.0 }
 0x2c9   : > { %626 = vadd.xlane.f32.xlu0 %v625_v51 }
 0x2ca   : > { %1393 = vmatpush3.bf16.msra.mxu0 %v1390_v41 }
 0x355   : > { %v630_v58 = vpop.xlane.xlu1 %629 }
 0x356   : > { %v632_v59 = vmul.f32 0.03125, %v630_v58  ;;  %v627_v60 = vpop.xlane.xlu0 %626 }
 0x357   : > { %v631_v61 = vmul.f32 0.03125, %v627_v60 }
 0x358   : > { %v634_v62 = vadd.f32 1e-05, %v632_v59 }
 0x359   : > { %v633_v63 = vadd.f32 1e-05, %v631_v61 }
 0x35a   : > { %1440 = vrsqrt.f32 %v634_v62 }
 0x35b   : > { %1442 = vrsqrt.f32 %v633_v63 }
 0x364   : > { %v1441_v0 = vpop.eup %1440 }
 0x365   : > { %v1443_v2 = vpop.eup %1442  ;;  %v638_v3 = vmul.f32 %v1441_v0, %v622_v46 }
 0x366   : > { %v637_v4 = vmul.f32 %v1443_v2, %v621_v47 }
 0x367   : > { %v646_v6 = vmul.f32 %v1249_v1, %v638_v3 }
 0x368   : > { %v645_v7 = vmul.f32 %v1249_v1, %v637_v4 }
 0x369   : > { %v654_v9 = vadd.f32 %v1250_v5, %v646_v6 }
 0x36a   : > { %v653_v8 = vadd.f32 %v1250_v5, %v645_v7 }
 0x36c   : > { %1317 = vmatprep.mubr.msk.f32.mxu1 %vm611_vm1, %v653_v8  ;;  %v1260_v8 = vld [vmem:[%s1853_s13] ss:$0 sm:$0xff] }
 0x36d   : > { %1318 = vmatmul.mubr.msk.f32.vlgmr.msra.gmra.mrb[2].mxu1 %vm611_vm1, %v654_v9 }
 0x36e   : > { %1321 = vmatpush3.msra.mxu1 %v829_v10 }
 0x440   : > { %v1319_v12 = vpop.f32.mrb[2].mxu1 }
 0x441   : > { %v744_v13 = vadd.f32 %v1319_v12, %v1251_v11  ;;  %v738_v14 = vpop.f32.mrb[3].mxu1 }
 0x442   : > { %v739_v15 = vadd.f32 %v1251_v11, %v738_v14 }
 0x443   : > { %779 = vxpose.xlu1.b32.start.end [1/1] (short) (narrow) %v744_v13, 16 }
 0x444   : > { %747 = vxpose.xlu0.b32.start.end [1/1] (short) (narrow) %v739_v15, 16 }
 0x4c3   : > { %v1705_v16 = vpop.trf.xlu1 }
 0x4c4   : > { %v1707_v17 = vpop.trf.xlu0  ;;  %v818_v19 = vsel %vm811_vm2, %v1705_v16, 0.0 }
 0x4c5   : > { %1322 = vmatprep.mubr.msk.f32.mxu1 %vm811_vm2, %v1707_v17  ;;  %v812_v18 = vsel %vm811_vm2, %v1707_v17, 0.0 }
 0x4c6   : > { %813 = vadd.xlane.f32.xlu0 %v812_v18 }
 0x4c7   : > { %v1721_v22 = vpop.trf.xlu1 }
 0x4c8   : > { %v1715_v20 = vpop.trf.xlu0  ;;  %v821_v23 = vsel %vm811_vm2, %v1721_v22, 0.0 }
 0x4c9   : > { %1323 = vmatmul.mubr.msk.f32.vlgmr.msra.gmra.mrb[4].mxu1 %vm811_vm2, %v1715_v20  ;;  %v815_v21 = vsel %vm811_vm2, %v1715_v20, 0.0 }
 0x4ca   : > { %819 = vadd.xlane.f32.xlu0 %v818_v19  ;;  %1325 = vmatprep.mubr.msk.f32.mxu1 %vm811_vm2, %v1705_v16 }
 0x4cb   : > { %816 = vadd.xlane.f32.xlu1 %v815_v21 }
 0x4cd   : > { %1326 = vmatmul.mubr.msk.f32.gmra.mrb[6].mxu1 %vm811_vm2, %v1721_v22 }
 0x4cf   : > { %822 = vadd.xlane.f32.xlu1 %v821_v23 }
 0x553   : > { %v814_v43 = vpop.xlane.xlu0 %813 }
 0x554   : > { %v825_v45 = vmul.f32 0.125, %v814_v43 }
 0x556   : > { %v837_v54 = vmul.f32 %v1254_v48, %v825_v45 }
 0x557   : > { %v820_v47 = vpop.xlane.xlu0 %819 }
 0x558   : > { %v817_v42 = vpop.xlane.xlu1 %816  ;;  %v827_v51 = vmul.f32 0.125, %v820_v47 }
 0x559   : > { %v826_v44 = vmul.f32 0.125, %v817_v42 }
 0x55a   : > { %v839_v61 = vmul.f32 %v1254_v48, %v827_v51 }
 0x55b   : > { %v838_v50 = vmul.f32 %v1254_v48, %v826_v44 }
 0x55c   : > { %v823_v46 = vpop.xlane.xlu1 %822 }
 0x55d   : > { %v828_v49 = vmul.f32 0.125, %v823_v46 }
 0x55f   : > { %v840_v59 = vmul.f32 %v1254_v48, %v828_v49 }
 0x59c   : > { %v1324_v52 = vpop.f32.mrb[4].mxu1 }
 0x59d   : > { %v925_v55 = vadd.f32 %v1324_v52, %v838_v50  ;;  %v919_v56 = vpop.f32.mrb[5].mxu1 }
 0x59e   : > { %v920_v57 = vadd.f32 %v919_v56, %v837_v54 }
 0x59f   : > { %v946_v58 = vadd.f32 %v1259_v53, %v925_v55 }
 0x5a0   : > { %v1327_v60 = vpop.f32.mrb[6].mxu1  ;;  %v945_v62 = vadd.f32 %v1259_v53, %v920_v57 }
 0x5a1   : > { %v935_v63 = vadd.f32 %v1327_v60, %v840_v59  ;;  %v929_v0 = vpop.f32.mrb[7].mxu1  ;;  %v950_v3 = vmax.f32 %v946_v58, 0.0 }
 0x5a2   : > { %v930_v1 = vadd.f32 %v929_v0, %v839_v61  ;;  %v949_v2 = vmax.f32 %v945_v62, 0.0 }
 0x5a3   : > { %v948_v4 = vadd.f32 %v1259_v53, %v935_v63 }
 0x5a4   : > { %v947_v5 = vadd.f32 %v1259_v53, %v930_v1  ;;  %1352 = vmatprep.mubr.msk.f32.mxu0 %vm972_vm3, %v949_v2 }
 0x5a5   : > { %1353 = vmatmul.mubr.msk.f32.vlgmr.msra.gmra.mrb[0].mxu0 %vm972_vm3, %v950_v3  ;;  %v952_v7 = vmax.f32 %v948_v4, 0.0 }
 0x5a6   : > { %v951_v6 = vmax.f32 %v947_v5, 0.0 }
 0x5a8   : > { %1355 = vmatprep.mubr.msk.f32.mxu0 %vm972_vm3, %v951_v6 }
 0x5a9   : > { %1356 = vmatmul.mubr.msk.f32.gmra.mrb[2].mxu0 %vm972_vm3, %v952_v7 }
 0x678   : > { %v1354_v9 = vpop.f32.mrb[0].mxu0 }
 0x679   : > { %v1057_v10 = vadd.f32 %v1354_v9, %v1260_v8  ;;  %v1051_v11 = vpop.f32.mrb[1].mxu0 }
 0x67a   : > { %v1052_v12 = vadd.f32 %v1260_v8, %v1051_v11 }
 0x67b   : > { %v1073_v13 = vsel %vm811_vm2, %v1057_v10, -inf }
 0x67c   : > { %1074 = vmax.xlane.f32.xlu1 %v1073_v13  ;;  %v1357_v14 = vpop.f32.mrb[2].mxu0  ;;  %v1070_v15 = vsel %vm811_vm2, %v1052_v12, -inf }
 0x67d   : > { %v1067_v18 = vadd.f32 %v1357_v14, %v1260_v8  ;;  %1071 = vmax.xlane.f32.xlu0 %v1070_v15  ;;  %v1061_v19 = vpop.f32.mrb[3].mxu0 }
 0x67e   : > { %v1062_v21 = vadd.f32 %v1260_v8, %v1061_v19 }
 0x67f   : > { %v1079_v23 = vsel %vm811_vm2, %v1067_v18, -inf }
 0x680   : > { %1080 = vmax.xlane.f32.xlu1 %v1079_v23  ;;  %v1076_v24 = vsel %vm811_vm2, %v1062_v21, -inf }
 0x681   : > { %1077 = vmax.xlane.f32.xlu0 %v1076_v24 }
 0x709   : > { %v1075_v25 = vpop.xlane.xlu1 %1074 }
 0x70a   : > { %v1083_v26 = vsub.f32 %v1057_v10, %v1075_v25  ;;  %v1072_v27 = vpop.xlane.xlu0 %1071 }
 0x70b   : > { %v1082_v28 = vsub.f32 %v1052_v12, %v1072_v27 }
 0x70c   : > { %v1088_v29 = vmul.f32 1.442695, %v1083_v26 }
 0x70d   : > { %v1086_v30 = vmul.f32 1.442695, %v1082_v28  ;;  %v1081_v31 = vpop.xlane.xlu1 %1080 }
 0x70e   : > { %1444 = vpow2.f32 %v1088_v29  ;;  %v1085_v32 = vsub.f32 %v1067_v18, %v1081_v31  ;;  %v1078_v33 = vpop.xlane.xlu0 %1077 }
 0x70f   : > { %1446 = vpow2.f32 %v1086_v30  ;;  %v1084_v34 = vsub.f32 %v1062_v21, %v1078_v33 }
 0x710   : > { %v1092_v35 = vmul.f32 1.442695, %v1085_v32 }
 0x711   : > { %v1090_v36 = vmul.f32 1.442695, %v1084_v34 }
 0x712   : > { %1448 = vpow2.f32 %v1092_v35 }
 0x713   : > { %1450 = vpow2.f32 %v1090_v36 }
 0x718   : > { %v1445_v37 = vpop.eup %1444 }
 0x719   : > { %v1447_v38 = vpop.eup %1446  ;;  %v1097_v39 = vsel %vm811_vm2, %v1445_v37, 0.0 }
 0x71a   : > { %1098 = vadd.xlane.f32.xlu1 %v1097_v39  ;;  %v1094_v40 = vsel %vm811_vm2, %v1447_v38, 0.0 }
 0x71b   : > { %1095 = vadd.xlane.f32.xlu0 %v1094_v40 }
 0x71c   : > { %v1449_v41 = vpop.eup %1448 }
 0x71d   : > { %v1451_v42 = vpop.eup %1450  ;;  %v1103_v43 = vsel %vm811_vm2, %v1449_v41, 0.0 }
 0x71e   : > { %1104 = vadd.xlane.f32.xlu1 %v1103_v43  ;;  %v1100_v44 = vsel %vm811_vm2, %v1451_v42, 0.0 }
 0x71f   : > { %1101 = vadd.xlane.f32.xlu0 %v1100_v44 }
 0x7a7   : > { %v1099_v45 = vpop.xlane.xlu1 %1098 }
 0x7a8   : > { %1452 = vrcp.f32 %v1099_v45  ;;  %v1096_v46 = vpop.xlane.xlu0 %1095 }
 0x7a9   : > { %1454 = vrcp.f32 %v1096_v46 }
 0x7ab   : > { %v1105_v47 = vpop.xlane.xlu1 %1104 }
 0x7ac   : > { %1456 = vrcp.f32 %v1105_v47  ;;  %v1102_v48 = vpop.xlane.xlu0 %1101 }
 0x7ad   : > { %1458 = vrcp.f32 %v1102_v48 }
 0x7b2   : > { %v1453_v49 = vpop.eup %1452 }
 0x7b3   : > { %v1455_v50 = vpop.eup %1454  ;;  %v1111_v51 = vmul.f32 %v1453_v49, %v1445_v37 }
 0x7b4   : > { %v1110_v52 = vmul.f32 %v1455_v50, %v1447_v38 }
 0x7b5   : > { %v1115_v53 = vmul.f32 %v1111_v51, %v1715_v20 }
 0x7b6   : > { %v1457_v54 = vpop.eup %1456  ;;  %v1114_v55 = vmul.f32 %v1110_v52, %v1707_v17  ;;  %v1134_v17 = vlaneseq }
 0x7b7   : > { %v1459_v56 = vpop.eup %1458  ;;  %v1121_v57 = vsel %vm811_vm2, %v1115_v53, 0.0  ;;  %v1113_v58 = vmul.f32 %v1457_v54, %v1449_v41 }
 0x7b8   : > { %1122 = vadd.xlane.f32.xlu1 %v1121_v57  ;;  %v1118_v59 = vsel %vm811_vm2, %v1114_v55, 0.0  ;;  %v1112_v60 = vmul.f32 %v1459_v56, %v1451_v42  ;;  %v1135_v0 = vand.u32 127, %v1134_v17  ;;  %v1137_v1 = vshrl.u32 %v1134_v17, 7 }
 0x7b9   : > { %1119 = vadd.xlane.f32.xlu0 %v1118_v59  ;;  %v1117_v61 = vmul.f32 %v1113_v58, %v1721_v22 }
 0x7ba   : > { %v1116_v62 = vmul.f32 %v1112_v60, %v1705_v16  ;;  %v1140_v2 = vadd.s32 4294967288, %v1135_v0  ;;  %v1138_v4 = vsub.s32 %v1135_v0, %v1137_v1 }
 0x7bb   : > { %v1127_v63 = vsel %vm811_vm2, %v1117_v61, 0.0 }
 0x7bc   : > { %1128 = vadd.xlane.f32.xlu1 %v1127_v63  ;;  %v1124_v20 = vsel %vm811_vm2, %v1116_v62, 0.0  ;;  %v1143_v3 = vsub.s32 %v1140_v2, %v1137_v1 }
 0x7bd   : > { %1125 = vadd.xlane.f32.xlu0 %v1124_v20 }
 0x845   : > { %v1123_v5 = vpop.xlane.xlu1 %1122 }
 0x846   : > { %v1144_v6 = vrot.slane %v1123_v5, %v1143_v3  ;;  %v1120_v22 = vpop.xlane.xlu0 %1119 }
 0x847   : > { %v1139_v16 = vrot.slane %v1120_v22, %v1138_v4 }
 0x849   : > { %v1146_v7 = vsel %vm1145_vm4, %v1144_v6, %v1139_v16  ;;  %v1129_v8 = vpop.xlane.xlu1 %1128 }
 0x84a   : > { %1159 = vst.msk [vmem:[%s461_s0] sm:$0x1] %vm1158_vm5, %v1146_v7  ;;  %v1154_v9 = vrot.slane %v1129_v8, %v1143_v3  ;;  %v1126_v10 = vpop.xlane.xlu0 %1125 }
 0x84b   : > { %v1150_v11 = vrot.slane %v1126_v10, %v1138_v4 }
 0x84d   : > { %v1155_v12 = vsel %vm1145_vm4, %v1154_v9, %v1150_v11 }
 0x84e   : > { %1160 = vst.msk [vmem:[%s461_s0 + $0x1] sm:$0x1] %vm1158_vm5, %v1155_v12 }
 0x84f   : > { %1473 = shalt.err (!%p1470_p3)
}
 0x850   : > { %s1474_s26 = scalar_lea.hbm %s1795_s2, 32  ;;  %s1478_s1 = scalar_lea.hbm %s1854_s14, 64 }
 0x851   : > { %p1475_p4 = scmp.ne.s32.totalorder %s1795_s2, %s1474_s26  ;;  %p1479_p9 = scmp.lt.u32.totalorder %s1795_s2, %s1854_s14 }
 0x852   : > { %p1480_p10 = scmp.lt.u32.totalorder %s1478_s1, %s1474_s26  ;;  %p1482_p12 = scmp.lt.u32.totalorder %s1474_s26, %s1795_s2 }
 0x853   : > { %p1476_p7 = pnand %p1475_p4, %p1640_p5 }
 0x854   : > { %p1481_p11 = por %p1480_p10, %p1479_p9 }
 0x855   : > { %p1477_p8 = pneg %p1476_p7 }
 0x856   : > { %p1483_p13 = por %p1482_p12, %p1481_p11 }
 0x858   : > { %p1484_p0 = pnand %p1483_p13, %p1477_p8 }
 0x85a   : > { %1487 = shalt.err (!%p1484_p0)
}
 0x85b   : > { %s1525_s17 = smov 16   ;;  %s1526_s20 = smov 1  }
 0x85c   : > { %1394 = dma.vmem_to_hbm [thread:$0]  (%p1640_p5), %s1797_s28, 32, %s1795_s2, %s1799_s21, %s1525_s17, %s1525_s17, %s1526_s20  }
 0x85d PF: > { %p1400_p1 = scmp.ge.s32.totalorder %s1522_s16, 2  ;;  %s1190_s0 = sand.u32 1, %s1510_s29  }
 0x85e   : > { %s1191_s26 = scalar_lea.sflag [#allocation3], %s1190_s0 }
 0x85f   : > { %p1397_p2 = pnand %p1400_p1, %p1644_p6 }
 0x861   : > { %1505 = dma.done.wait (!%p1397_p2), %s1191_s26, 32  }
 0x862   : > { %1507 = vsyncadd (!%p1397_p2), %s1191_s26, 4294967264  ;;  %p24_p3 = scmp.ge.s32.totalorder %s1627_s19, 4   ;;  %s1863_s29 = smov %s1514_s30 }
 0x863   : > { %s1864_s30 = smov %s1518_s15  ;;  %s1865_s15 = smov %s1638_s22 }
 0x864   : > { %s1866_s16 = smov %s1627_s19  ;;  %26 = sbr.rel (!%p24_p3) target bundleno = 7 (0x7), region = 111 }
 0x86b   :  { %1196 = vsyncpa [#allocation3], 1 }
 0x86c   :  { %1198 = vsyncpa [#allocation3 + $0x1], 1 }

</bundles_post_ra>
